<compile_context>
chip_gen: v6e
topology: v6e:2x2x1
jax: 0.10.0
libtpu: 0.0.40
codegen_flags: <defaults>
</compile_context>

<pallas_src>
import functools

import jax
import jax.numpy as jnp
from jax.experimental import pallas as pl
from jax.experimental.pallas import tpu as pltpu

ALPHA = 1.0
GAMMA = 2  # integer exponent -> explicit multiply chain, never a float pow


def _focal_loss_kernel(logits_ref, targets_ref, out_ref, *, tile_n, n_total):
    # logits_ref: (tile_n, C) float; targets_ref: (tile_n, 1) int32
    # out_ref:    (1, 8, 128) f32 -- this block's partial sum, broadcast
    logits = logits_ref[...].astype(jnp.float32)            # (T, C)
    tgt = targets_ref[...]                                   # (T, 1) int32
    t, c = logits.shape

    # numerically stable softmax pieces (row-wise)
    row_max = jnp.max(logits, axis=-1, keepdims=True)        # (T, 1)
    shifted = logits - row_max                                # (T, C)
    exp_shifted = jnp.exp(shifted)                            # (T, C)  EUP
    sum_exp = jnp.sum(exp_shifted, axis=-1, keepdims=True)    # (T, 1)  XLU

    # fused one-hot "gather" of the target column (no dynamic gather on TPU)
    col_ids = jax.lax.broadcasted_iota(jnp.int32, (t, c), 1)
    is_tgt = col_ids == tgt
    shifted_tgt = jnp.sum(jnp.where(is_tgt, shifted, 0.0), axis=-1, keepdims=True)
    exp_tgt = jnp.sum(jnp.where(is_tgt, exp_shifted, 0.0), axis=-1, keepdims=True)

    # ce = logsumexp(shifted) - shifted_tgt ; pt = exp(-ce) reusing exp(shifted)
    ce = jnp.log(sum_exp) - shifted_tgt                       # (T, 1)
    pt = exp_tgt * pl.reciprocal(sum_exp, approx=True)        # (T, 1)  EUP vrcp
    w = jnp.maximum(1.0 - pt, 0.0)                            # clamp rounding
    focal = (ALPHA * w * w) * ce                              # gamma == 2

    # mask rows past the true batch size (wrapper zero-pads to a tile multiple)
    row_ids = pl.program_id(0) * tile_n + jax.lax.broadcasted_iota(
        jnp.int32, (t, 1), 0)
    focal = jnp.where(row_ids < n_total, focal, 0.0)

    psum = jnp.sum(focal)
    out_ref[...] = jnp.full((1, 8, 128), psum, dtype=jnp.float32)


def _pick_tile_n(n, c, itemsize):
    # Keep the double-buffered logits tile well under scoped VMEM on every
    # generation (v7x has only 64 MiB physical / 32 MiB scoped per TC).
    budget = 8 * 1024 * 1024                       # bytes for 2x logits tile
    t = budget // (2 * max(c, 1) * itemsize)
    t = int(max(8, min(512, (t // 8) * 8)))        # multiple of 8 sublanes
    n_pad8 = -(-n // 8) * 8
    return min(t, max(8, n_pad8))


def focal_loss(logits, targets):
    """logits: (N, C) float array; targets: (N,) integer class indices."""
    n, c = logits.shape
    tile_n = _pick_tile_n(n, c, jnp.dtype(logits.dtype).itemsize)
    nb = pl.cdiv(n, tile_n)
    n_pad = nb * tile_n
    if n_pad != n:
        logits = jnp.pad(logits, ((0, n_pad - n), (0, 0)))
        targets = jnp.pad(targets, (0, n_pad - n))
    targets_2d = targets.astype(jnp.int32).reshape(n_pad, 1)

    kernel = functools.partial(_focal_loss_kernel, tile_n=tile_n, n_total=n)
    partials = pl.pallas_call(
        kernel,
        out_shape=jax.ShapeDtypeStruct((nb, 8, 128), jnp.float32),
        grid=(nb,),
        in_specs=[
            pl.BlockSpec((tile_n, c), lambda i: (i, 0)),
            pl.BlockSpec((tile_n, 1), lambda i: (i, 0)),
        ],
        out_specs=pl.BlockSpec((1, 8, 128), lambda i: (i, 0, 0)),
        compiler_params=pltpu.CompilerParams(
            dimension_semantics=("parallel",),      # megacore-shardable on v7x
            vmem_limit_bytes=32 * 1024 * 1024,      # raise v5e's 16 MiB default
        ),
    )(logits, targets_2d)

    # final mean over the true batch size (padded rows were masked to 0)
    return jnp.sum(partials[:, 0, 0]) / jnp.float32(n)


if __name__ == "__main__":
    key = jax.random.PRNGKey(0)
    k_logits, k_targets = jax.random.split(key)

    N, C = 8, 32  # small shapes: batch=8, classes=32
    logits = jax.random.normal(k_logits, (N, C), dtype=jnp.float32)
    targets = jax.random.randint(k_targets, (N,), 0, C, dtype=jnp.int32)

    loss = focal_loss(logits, targets)
    jax.block_until_ready(loss)

    # sanity check against a pure-JAX reference (tolerance covers the
    # approximate EUP reciprocal used for pt)
    log_probs = jax.nn.log_softmax(logits, axis=-1)
    ce_ref = -jnp.take_along_axis(log_probs, targets[:, None], axis=-1)[:, 0]
    pt_ref = jnp.exp(-ce_ref)
    ref = jnp.mean(ALPHA * (1.0 - pt_ref) ** GAMMA * ce_ref)
    assert jnp.allclose(loss, ref, atol=5e-3, rtol=5e-3), (loss, ref)

    print("KERNEL_OK")
</pallas_src>

<mosaic_0001>
module attributes {stable_mosaic.version = 11 : i64} {
  func.func @_focal_loss_kernel(%arg0: i32, %arg1: memref<8x32xf32, #tpu.memory_space<vmem>>, %arg2: memref<8x1xi32, #tpu.memory_space<vmem>>, %arg3: memref<1x8x128xf32, #tpu.memory_space<vmem>>) attributes {dimension_semantics = [#tpu.dimension_semantics<parallel>], iteration_bounds = array<i64: 1>, scalar_prefetch = 0 : i64, scratch_operands = 0 : i64, tpu.core_type = #tpu.core_type<tc>, window_params = [{transform_indices = @transform_0, window_bounds = array<i64: 8, 32>}, {transform_indices = @transform_1, window_bounds = array<i64: 8, 1>}, {transform_indices = @transform_2, window_bounds = array<i64: 1, 8, 128>}]} {
    %c0 = arith.constant 0 : index
    %c0_0 = arith.constant 0 : index
    %0 = vector.load %arg1[%c0, %c0_0] : memref<8x32xf32, #tpu.memory_space<vmem>>, vector<8x32xf32>
    %c0_1 = arith.constant 0 : index
    %c0_2 = arith.constant 0 : index
    %1 = vector.load %arg2[%c0_1, %c0_2] : memref<8x1xi32, #tpu.memory_space<vmem>>, vector<8x1xi32>
    %cst = arith.constant dense<0xFF800000> : vector<8xf32>
    %2 = vector.multi_reduction <maximumf>, %0, %cst [1] : vector<8x32xf32> to vector<8xf32>
    %3 = vector.shape_cast %2 : vector<8xf32> to vector<8x1xf32>
    %4 = vector.broadcast %3 : vector<8x1xf32> to vector<8x32xf32>
    %5 = arith.subf %0, %4 : vector<8x32xf32>
    %6 = math.exp %5 : vector<8x32xf32>
    %cst_3 = arith.constant dense<0.000000e+00> : vector<8xf32>
    %7 = vector.multi_reduction <add>, %6, %cst_3 [1] : vector<8x32xf32> to vector<8xf32>
    %8 = vector.shape_cast %7 : vector<8xf32> to vector<8x1xf32>
    %9 = tpu.iota {dimensions = array<i32: 1>} : vector<8x32xi32>
    %10 = vector.broadcast %1 : vector<8x1xi32> to vector<8x32xi32>
    %11 = arith.cmpi eq, %9, %10 : vector<8x32xi32>
    %cst_4 = arith.constant 0.000000e+00 : f32
    %12 = vector.broadcast %cst_4 : f32 to vector<8x32xf32>
    %13 = arith.select %11, %5, %12 : vector<8x32xi1>, vector<8x32xf32>
    %cst_5 = arith.constant dense<0.000000e+00> : vector<8xf32>
    %14 = vector.multi_reduction <add>, %13, %cst_5 [1] : vector<8x32xf32> to vector<8xf32>
    %15 = vector.shape_cast %14 : vector<8xf32> to vector<8x1xf32>
    %cst_6 = arith.constant 0.000000e+00 : f32
    %16 = vector.broadcast %cst_6 : f32 to vector<8x32xf32>
    %17 = arith.select %11, %6, %16 : vector<8x32xi1>, vector<8x32xf32>
    %cst_7 = arith.constant dense<0.000000e+00> : vector<8xf32>
    %18 = vector.multi_reduction <add>, %17, %cst_7 [1] : vector<8x32xf32> to vector<8xf32>
    %19 = vector.shape_cast %18 : vector<8xf32> to vector<8x1xf32>
    %20 = math.log %8 : vector<8x1xf32>
    %21 = arith.subf %20, %15 : vector<8x1xf32>
    %22 = tpu.reciprocal %8 {approx = true} : vector<8x1xf32> -> vector<8x1xf32>
    %23 = arith.mulf %19, %22 : vector<8x1xf32>
    %cst_8 = arith.constant 1.000000e+00 : f32
    %24 = vector.broadcast %cst_8 : f32 to vector<8x1xf32>
    %25 = arith.subf %24, %23 : vector<8x1xf32>
    %cst_9 = arith.constant 0.000000e+00 : f32
    %26 = vector.broadcast %cst_9 : f32 to vector<8x1xf32>
    %27 = arith.maximumf %25, %26 : vector<8x1xf32>
    %cst_10 = arith.constant 1.000000e+00 : f32
    %28 = vector.broadcast %cst_10 : f32 to vector<8x1xf32>
    %29 = arith.mulf %28, %27 : vector<8x1xf32>
    %30 = arith.mulf %29, %27 : vector<8x1xf32>
    %31 = arith.mulf %30, %21 : vector<8x1xf32>
    %c8_i32 = arith.constant 8 : i32
    %32 = arith.muli %arg0, %c8_i32 : i32
    %33 = tpu.iota {dimensions = array<i32: 0>} : vector<8x1xi32>
    %34 = vector.broadcast %32 : i32 to vector<8x1xi32>
    %35 = arith.addi %34, %33 : vector<8x1xi32>
    %c8_i32_11 = arith.constant 8 : i32
    %36 = vector.broadcast %c8_i32_11 : i32 to vector<8x1xi32>
    %37 = arith.cmpi slt, %35, %36 : vector<8x1xi32>
    %cst_12 = arith.constant 0.000000e+00 : f32
    %38 = vector.broadcast %cst_12 : f32 to vector<8x1xf32>
    %39 = arith.select %37, %31, %38 : vector<8x1xi1>, vector<8x1xf32>
    %40 = vector.shape_cast %39 : vector<8x1xf32> to vector<1x8x1xf32>
    %cst_13 = arith.constant dense<0.000000e+00> : vector<1xf32>
    %41 = vector.multi_reduction <add>, %40, %cst_13 [1, 2] : vector<1x8x1xf32> to vector<1xf32>
    %42 = vector.shape_cast %41 : vector<1xf32> to vector<1x1x1xf32>
    %43 = vector.extract %42[0, 0, 0] : f32 from vector<1x1x1xf32>
    %44 = vector.broadcast %43 : f32 to vector<1x8x128xf32>
    %c0_14 = arith.constant 0 : index
    %c0_15 = arith.constant 0 : index
    %c0_16 = arith.constant 0 : index
    %45 = vector.load %arg3[%c0_14, %c0_15, %c0_16] : memref<1x8x128xf32, #tpu.memory_space<vmem>>, vector<1x8x128xf32>
    tpu.vector_store %arg3[%c0_14, %c0_15, %c0_16], %44 {strides = array<i32>} : memref<1x8x128xf32, #tpu.memory_space<vmem>>, vector<1x8x128xf32>,
    return
  }
  func.func @transform_0(%arg0: i32) -> (i32, i32) {
    %c0_i32 = arith.constant 0 : i32
    %c0_i32_0 = arith.constant 0 : i32
    return %arg0, %c0_i32 : i32, i32
  }
  func.func @transform_1(%arg0: i32) -> (i32, i32) {
    %c0_i32 = arith.constant 0 : i32
    %c0_i32_0 = arith.constant 0 : i32
    return %arg0, %c0_i32 : i32, i32
  }
  func.func @transform_2(%arg0: i32) -> (i32, i32, i32) {
    %c0_i32 = arith.constant 0 : i32
    %c0_i32_0 = arith.constant 0 : i32
    %c0_i32_1 = arith.constant 0 : i32
    return %arg0, %c0_i32, %c0_i32_0 : i32, i32, i32
  }
}

</mosaic_0001>

<bundles_post_ra>
// kernel: tpu_custom_call.1
= control target key start
LH: loop header
LB: loop body
LE: loop exit
PB: predicated region body
PF: predicated region fallthrough
CT: control target
= control target key end

     0   :  { %vm14_vm0 = vcmask 261120   ;;  %s144_s0 = inlined_call_operand.vmem [shape: f32[8,32], index: 0, kind: input, shape index: {}]   ;;  %s145_s1 = inlined_call_operand.vmem [shape: s32[8,1], index: 1, kind: input, shape index: {}]   ;;  %s146_s2 = inlined_call_operand.hbm [shape: f32[1,8,128], index: 2, kind: output, shape index: {}]  }
   0x1   :  { %v12_v0 = vld [vmem:[%s144_s0] sm:$0xff] }
   0x2   :  { %7 = vsyncpa [#allocation3], 0  ;;  %v15_v1 = vsel %vm14_vm0, %v12_v0, -inf  ;;  %v114_v2 = vmov 0   ;;  %v13_v3 = vld [vmem:[%s145_s1] sm:$0xff]  ;;  %v24_v7 = vlaneseq  ;;  %vm54_vm2 = vcmask 7168  }
   0x3   :  { %85 = vset.pattern.permute.xlu0 %v114_v2  ;;  %s115_s0 = smov [#allocation2]  }
   0x4   :  { %16 = vmax.xlane.f32.xlu0 %v15_v1  ;;  %v25_v8 = vand.u32 127, %v24_v7  ;;  %s73_s1 = sshll.u32 %s115_s0, 4  ;;  %s74_s1 = int_to_ptr.vmem [resolvable:$true] %s73_s1 }
   0x5   :  { %s92_s14 = scalar_lea.vmem %s74_s1, 128  ;;  %p97_p1 = scmp.lt.s32.totalorder %s74_s1, %s74_s1 }
   0x6   :  { %p93_p0 = scmp.ne.s32.totalorder %s74_s1, %s92_s14  ;;  %p98_p2 = scmp.lt.s32.totalorder %s92_s14, %s92_s14 }
   0x8   :  { %p99_p3 = por %p98_p2, %p97_p1 }
   0xa   :  { %p100_p4 = pnand %p99_p3, %p93_p0 }
  0x1a   :  { %27 = vperm.xlu0 %85, %v13_v3  }
  0x8d   :  { %v17_v4 = vpop.xlane.xlu0 %16 }
  0x8e   :  { %v18_v5 = vsub.f32 %v12_v0, %v17_v4 }
  0x90   :  { %v19_v6 = vmul.f32 1.442695, %v18_v5 }
  0x92   :  { %86 = vpow2.f32 %v19_v6 }
  0x95   :  { %v28_v9 = vpop.permute.xlu0 %27 }
  0x96   :  { %vm29_vm1 = vcmp.eq.s32.totalorder %v25_v8, %v28_v9 }
  0x97   :  { %v30_v14 = vsel %vm29_vm1, %v18_v5, 0.0 }
  0x98   :  { %v31_v15 = vsel %vm14_vm0, %v30_v14, 0.0 }
  0x9f   :  { %v87_v10 = vpop.eup %86 }
  0xa0   :  { %v21_v11 = vsel %vm14_vm0, %v87_v10, 0.0  ;;  %v34_v12 = vsel %vm29_vm1, %v87_v10, 0.0 }
  0xa1   :  { %22 = vadd.xlane.f32.xlu1 %v21_v11  ;;  %v35_v13 = vsel %vm14_vm0, %v34_v12, 0.0 }
  0xa5   :  { %36 = vadd.xlane.f32.xlu1 %v35_v13 }
  0xa9   :  { %32 = vadd.xlane.f32.xlu1 %v31_v15 }
 0x12a   :  { %v23_v16 = vpop.xlane.xlu1 %22 }
 0x12b   :  { %88 = vlog2.f32 %v23_v16 }
 0x12c   :  { %90 = vrcp.f32 %v23_v16 }
 0x12e   :  { %v37_v19 = vpop.xlane.xlu1 %36 }
 0x132   :  { %v33_v24 = vpop.xlane.xlu1 %32 }
 0x138   :  { %v89_v17 = vpop.eup %88 }
 0x139   :  { %v91_v18 = vpop.eup %90  ;;  %v39_v22 = vmul.f32 0.6931472, %v89_v17 }
 0x13a   :  { %v42_v20 = vmul.f32 %v91_v18, %v37_v19 }
 0x13b   :  { %v40_v26 = vsub.f32 %v39_v22, %v33_v24 }
 0x13c   :  { %v43_v21 = vsub.f32 1.0, %v42_v20 }
 0x13e   :  { %v44_v23 = vmax.f32 %v43_v21, 0.0 }
 0x140   :  { %v45_v25 = vmul.f32 %v44_v23, %v44_v23 }
 0x142   :  { %v46_v27 = vmul.f32 %v45_v25, %v40_v26 }
 0x144   :  { %v55_v28 = vsel %vm54_vm2, %v46_v27, 0.0 }
 0x145   :  { %56 = vadd.xlane.f32.xlu1 %v55_v28 }
 0x1ce   :  { %v57_v29 = vpop.xlane.xlu1 %56 }
 0x1cf   :  { %v58_v30 = vrot.slane %v57_v29, 4 }
 0x1d1   :  { %v59_v31 = vadd.f32 %v58_v30, %v57_v29 }
 0x1d3   :  { %v60_v32 = vrot.slane %v59_v31, 2 }
 0x1d5   :  { %v61_v33 = vadd.f32 %v60_v32, %v59_v31 }
 0x1d7   :  { %v62_v34 = vrot.slane %v61_v33, 1 }
 0x1d9   :  { %v63_v35 = vadd.f32 %v62_v34, %v61_v33 }
 0x1db   :  { %81 = vpush %v63_v35 }
 0x20c   :  { %s82_s13 = spop %81 }
 0x20d   :  { %v65_v36 = vstv %s82_s13 }
 0x20e   :  { %66 = vst [vmem:[#allocation2] sm:$0xff] %v65_v36 }
 0x20f   :  { %103 = shalt.err (!%p100_p4)
}
 0x210   :  { %76 = dma.vmem_to_hbm [thread:$0]  %s74_s1, 128, %s146_s2, [#allocation3]  }
 0x211   :  { %112 = dma.done.wait [#allocation3], 128  }
 0x212   :  { %113 = vsyncadd [#allocation3], 4294967168 }
 0x213   :  { %80 = vsyncpa [#allocation3], 1 }

</bundles_post_ra>
